<compile_context>
chip_gen: v5e
topology: v5e:2x2
jax: 0.10.0
libtpu: 0.0.40
codegen_flags: <defaults>
</compile_context>

<pallas_src>
import functools

import jax
import jax.numpy as jnp
from jax.experimental import pallas as pl
from jax.experimental.pallas import tpu as pltpu


def _round_up(x, m):
    return (x + m - 1) // m * m


# ----------------------------------------------------------------------------
# Pallas kernel: fused 3-layer 1x1-conv MLP (BN folded), channel-major tiles.
# Block shapes (batch dim squeezed):
#   x_ref : (2,      TN)  bf16      w*_ref : folded conv weights (Cout, Cin) bf16
#   o_ref : (c_out,  TN)  out_dtype t*_ref / b3_ref : per-channel bias (C, 1) f32
# ----------------------------------------------------------------------------
def _pos_enc_kernel(x_ref, w1_ref, t1_ref, w2_ref, t2_ref, w3_ref, b3_ref,
                    o_ref):
    # layer 1: (32, 2) @ (2, TN) -> +bias -> ReLU   (f32 accumulate)
    h = jnp.dot(w1_ref[...], x_ref[...], preferred_element_type=jnp.float32)
    h = jnp.maximum(h + t1_ref[...], 0.0).astype(w2_ref.dtype)
    # layer 2: (64, 32) @ (32, TN) -> +bias -> ReLU
    h = jnp.dot(w2_ref[...], h, preferred_element_type=jnp.float32)
    h = jnp.maximum(h + t2_ref[...], 0.0).astype(w3_ref.dtype)
    # layer 3: (c_out, 64) @ (64, TN) + bias
    y = jnp.dot(w3_ref[...], h, preferred_element_type=jnp.float32) + b3_ref[...]
    o_ref[...] = y.astype(o_ref.dtype)


def position_encoder_pallas(x_ncw, folded_params, *, tile_n=4096,
                            compute_dtype=jnp.bfloat16,
                            out_dtype=jnp.float32):
    """x_ncw: (B, 2, N).  Returns (B, channels, N) in out_dtype (NCW, like PyTorch)."""
    w1, t1, w2, t2, w3, b3 = folded_params
    B, C_in, N = x_ncw.shape
    assert C_in == 2
    c_out = w3.shape[0]

    # Lane-dense tile along the position axis; clamp for small N, pad up.
    tn = _round_up(min(tile_n, _round_up(N, 128)), 128)
    n_pad = _round_up(N, tn)

    x = x_ncw.astype(compute_dtype)
    if n_pad != N:
        x = jnp.pad(x, ((0, 0), (0, 0), (0, n_pad - N)))

    w1c = w1.astype(compute_dtype)
    w2c = w2.astype(compute_dtype)
    w3c = w3.astype(compute_dtype)
    t1c = t1.astype(jnp.float32)
    t2c = t2.astype(jnp.float32)
    b3c = b3.astype(jnp.float32)

    grid = (B, n_pad // tn)
    full = lambda b, n: (0, 0)

    c_dt = jnp.dtype(compute_dtype).itemsize
    o_dt = jnp.dtype(out_dtype).itemsize
    flops = 2 * B * n_pad * (C_in * 32 + 32 * 64 + 64 * c_out)
    bytes_accessed = (B * n_pad * C_in * c_dt          # input
                      + B * n_pad * c_out * o_dt       # output (dominant)
                      + (w1c.size + w2c.size + w3c.size) * c_dt
                      + (t1c.size + t2c.size + b3c.size) * 4)

    out = pl.pallas_call(
        _pos_enc_kernel,
        out_shape=jax.ShapeDtypeStruct((B, c_out, n_pad), out_dtype),
        grid_spec=pltpu.PrefetchScalarGridSpec(
            num_scalar_prefetch=0,
            grid=grid,
            in_specs=[
                pl.BlockSpec((None, C_in, tn), lambda b, n: (b, 0, n)),  # x slab
                pl.BlockSpec(w1c.shape, full),   # (32, 2)
                pl.BlockSpec(t1c.shape, full),   # (32, 1)
                pl.BlockSpec(w2c.shape, full),   # (64, 32)
                pl.BlockSpec(t2c.shape, full),   # (64, 1)
                pl.BlockSpec(w3c.shape, full),   # (c_out, 64)
                pl.BlockSpec(b3c.shape, full),   # (c_out, 1)
            ],
            out_specs=pl.BlockSpec((None, c_out, tn), lambda b, n: (b, 0, n)),
        ),
        compiler_params=pltpu.CompilerParams(
            dimension_semantics=("parallel", "parallel"),
            vmem_limit_bytes=48 * 1024 * 1024),
        cost_estimate=pl.CostEstimate(flops=int(flops), transcendentals=0,
                                      bytes_accessed=int(bytes_accessed)),
    )(x, w1c, t1c, w2c, t2c, w3c, b3c)

    if n_pad != N:
        out = out[:, :, :N]
    return out


# ----------------------------------------------------------------------------
# Deterministic parameter construction with the BN (inference mode) folded
# into the conv weights:  w' = (gamma / sqrt(var+eps)) * w ,
#                         bias = (conv_bias - mean) * scale + beta .
# ----------------------------------------------------------------------------
def make_folded_params(key, channels):
    ks = jax.random.split(key, 10)
    eps = 1e-5

    def conv_w(k, cin, cout):
        # PyTorch Conv1d(cin, cout, 1).weight squeezed -> (cout, cin)
        return (jax.random.normal(k, (cout, cin), jnp.float32)
                / jnp.sqrt(jnp.float32(cin)))

    # layer 1: conv(2->32) + BN(32)
    w1 = conv_w(ks[0], 2, 32)
    b1 = 0.01 * jax.random.normal(ks[1], (32,), jnp.float32)
    g1 = 1.0 + 0.1 * jax.random.normal(ks[2], (32,), jnp.float32)
    be1 = 0.1 * jax.random.normal(ks[3], (32,), jnp.float32)
    rm1 = jnp.zeros((32,), jnp.float32)
    rv1 = jnp.ones((32,), jnp.float32)
    s1 = g1 / jnp.sqrt(rv1 + eps)
    w1f = w1 * s1[:, None]
    t1 = ((b1 - rm1) * s1 + be1)[:, None]          # (32, 1)

    # layer 2: conv(32->64) + BN(64)
    w2 = conv_w(ks[4], 32, 64)
    b2 = 0.01 * jax.random.normal(ks[5], (64,), jnp.float32)
    g2 = 1.0 + 0.1 * jax.random.normal(ks[6], (64,), jnp.float32)
    be2 = 0.1 * jax.random.normal(ks[7], (64,), jnp.float32)
    rm2 = jnp.zeros((64,), jnp.float32)
    rv2 = jnp.ones((64,), jnp.float32)
    s2 = g2 / jnp.sqrt(rv2 + eps)
    w2f = w2 * s2[:, None]
    t2 = ((b2 - rm2) * s2 + be2)[:, None]          # (64, 1)

    # layer 3: conv(64->channels), no BN
    w3 = conv_w(ks[8], 64, channels)
    b3 = (0.01 * jax.random.normal(ks[9], (channels,), jnp.float32))[:, None]

    return (w1f, t1, w2f, t2, w3, b3)


# Pure-JAX references.
def position_encoder_ref_f32(x_ncw, params):
    """Full-f32 math (original module semantics, BN folded exactly)."""
    w1, t1, w2, t2, w3, b3 = params
    h = jnp.maximum(jnp.einsum('oc,bcn->bon', w1, x_ncw) + t1, 0.0)
    h = jnp.maximum(jnp.einsum('oc,bcn->bon', w2, h) + t2, 0.0)
    return jnp.einsum('oc,bcn->bon', w3, h) + b3


def position_encoder_ref_bf16(x_ncw, params):
    """Mirrors the kernel's bf16 compute / f32 accumulate exactly."""
    w1, t1, w2, t2, w3, b3 = params
    cd = jnp.bfloat16
    x = x_ncw.astype(cd)
    h = jnp.einsum('oc,bcn->bon', w1.astype(cd), x,
                   preferred_element_type=jnp.float32)
    h = jnp.maximum(h + t1, 0.0).astype(cd)
    h = jnp.einsum('oc,bcn->bon', w2.astype(cd), h,
                   preferred_element_type=jnp.float32)
    h = jnp.maximum(h + t2, 0.0).astype(cd)
    y = jnp.einsum('oc,bcn->bon', w3.astype(cd), h,
                   preferred_element_type=jnp.float32) + b3
    return y


if __name__ == "__main__":
    key = jax.random.PRNGKey(0)
    k_x, k_p = jax.random.split(key)

    B, N, channels = 2, 256, 128          # x: (B, 2, N) keypoint coords
    x = jax.random.normal(k_x, (B, 2, N), jnp.float32)
    params = make_folded_params(k_p, channels)

    fn = jax.jit(functools.partial(position_encoder_pallas, tile_n=4096))
    out = jax.block_until_ready(fn(x, params))
    assert out.shape == (B, channels, N)

    # Tight check vs a reference that mirrors the kernel's bf16/f32 math.
    ref_bf16 = position_encoder_ref_bf16(x, params)
    assert jnp.allclose(out, ref_bf16, atol=1e-2, rtol=1e-2), \
        "mismatch vs bf16-mirrored reference"

    # Looser check vs full-f32 module semantics (bf16 weight/activation cast).
    ref_f32 = position_encoder_ref_f32(x, params)
    assert jnp.allclose(out.astype(jnp.float32), ref_f32,
                        atol=5e-2, rtol=5e-2), "mismatch vs f32 reference"

    print("KERNEL_OK")
</pallas_src>

<mosaic_0001>
module attributes {stable_mosaic.version = 11 : i64} {
  func.func @_pos_enc_kernel(%arg0: i32, %arg1: i32, %arg2: memref<1x2x256xbf16, #tpu.memory_space<vmem>>, %arg3: memref<32x2xbf16, #tpu.memory_space<vmem>>, %arg4: memref<32x1xf32, #tpu.memory_space<vmem>>, %arg5: memref<64x32xbf16, #tpu.memory_space<vmem>>, %arg6: memref<64x1xf32, #tpu.memory_space<vmem>>, %arg7: memref<128x64xbf16, #tpu.memory_space<vmem>>, %arg8: memref<128x1xf32, #tpu.memory_space<vmem>>, %arg9: memref<1x128x256xf32, #tpu.memory_space<vmem>>) attributes {dimension_semantics = [#tpu.dimension_semantics<parallel>, #tpu.dimension_semantics<parallel>], iteration_bounds = array<i64: 2, 1>, scalar_prefetch = 0 : i64, scratch_operands = 0 : i64, tpu.core_type = #tpu.core_type<tc>, window_params = [{transform_indices = @transform_0, window_bounds = array<i64: 1, 2, 256>}, {pipeline_mode = #tpu.pipeline_mode<synchronous>, transform_indices = @transform_1, window_bounds = array<i64: 32, 2>}, {pipeline_mode = #tpu.pipeline_mode<synchronous>, transform_indices = @transform_2, window_bounds = array<i64: 32, 1>}, {pipeline_mode = #tpu.pipeline_mode<synchronous>, transform_indices = @transform_3, window_bounds = array<i64: 64, 32>}, {pipeline_mode = #tpu.pipeline_mode<synchronous>, transform_indices = @transform_4, window_bounds = array<i64: 64, 1>}, {pipeline_mode = #tpu.pipeline_mode<synchronous>, transform_indices = @transform_5, window_bounds = array<i64: 128, 64>}, {pipeline_mode = #tpu.pipeline_mode<synchronous>, transform_indices = @transform_6, window_bounds = array<i64: 128, 1>}, {transform_indices = @transform_7, window_bounds = array<i64: 1, 128, 256>}]} {
    %c0 = arith.constant 0 : index
    %c0_0 = arith.constant 0 : index
    %0 = vector.load %arg3[%c0, %c0_0] : memref<32x2xbf16, #tpu.memory_space<vmem>>, vector<32x2xbf16>
    %c0_1 = arith.constant 0 : index
    %c0_2 = arith.constant 0 : index
    %c0_3 = arith.constant 0 : index
    %1 = vector.load %arg2[%c0_1, %c0_2, %c0_3] : memref<1x2x256xbf16, #tpu.memory_space<vmem>>, vector<1x2x256xbf16>
    %2 = vector.shape_cast %1 : vector<1x2x256xbf16> to vector<2x256xbf16>
    %cst = arith.constant dense<0.000000e+00> : vector<32x256xf32>
    %3 = tpu.matmul %0, %2, %cst {dimension_numbers = #tpu.dot_dimension_numbers<[1], [0], [0], [1], [0, 0, 1, 1], [], []>} : vector<32x2xbf16>, vector<2x256xbf16>, vector<32x256xf32> -> vector<32x256xf32>
    %c0_4 = arith.constant 0 : index
    %c0_5 = arith.constant 0 : index
    %4 = vector.load %arg4[%c0_4, %c0_5] : memref<32x1xf32, #tpu.memory_space<vmem>>, vector<32x1xf32>
    %5 = vector.broadcast %4 : vector<32x1xf32> to vector<32x256xf32>
    %6 = arith.addf %3, %5 : vector<32x256xf32>
    %cst_6 = arith.constant 0.000000e+00 : f32
    %7 = vector.broadcast %cst_6 : f32 to vector<32x256xf32>
    %8 = arith.maximumf %6, %7 : vector<32x256xf32>
    %9 = arith.truncf %8 : vector<32x256xf32> to vector<32x256xbf16>
    %c0_7 = arith.constant 0 : index
    %c0_8 = arith.constant 0 : index
    %10 = vector.load %arg5[%c0_7, %c0_8] : memref<64x32xbf16, #tpu.memory_space<vmem>>, vector<64x32xbf16>
    %cst_9 = arith.constant dense<0.000000e+00> : vector<64x256xf32>
    %11 = tpu.matmul %10, %9, %cst_9 {dimension_numbers = #tpu.dot_dimension_numbers<[1], [0], [0], [1], [0, 0, 1, 1], [], []>} : vector<64x32xbf16>, vector<32x256xbf16>, vector<64x256xf32> -> vector<64x256xf32>
    %c0_10 = arith.constant 0 : index
    %c0_11 = arith.constant 0 : index
    %12 = vector.load %arg6[%c0_10, %c0_11] : memref<64x1xf32, #tpu.memory_space<vmem>>, vector<64x1xf32>
    %13 = vector.broadcast %12 : vector<64x1xf32> to vector<64x256xf32>
    %14 = arith.addf %11, %13 : vector<64x256xf32>
    %cst_12 = arith.constant 0.000000e+00 : f32
    %15 = vector.broadcast %cst_12 : f32 to vector<64x256xf32>
    %16 = arith.maximumf %14, %15 : vector<64x256xf32>
    %17 = arith.truncf %16 : vector<64x256xf32> to vector<64x256xbf16>
    %c0_13 = arith.constant 0 : index
    %c0_14 = arith.constant 0 : index
    %18 = vector.load %arg7[%c0_13, %c0_14] : memref<128x64xbf16, #tpu.memory_space<vmem>>, vector<128x64xbf16>
    %cst_15 = arith.constant dense<0.000000e+00> : vector<128x256xf32>
    %19 = tpu.matmul %18, %17, %cst_15 {dimension_numbers = #tpu.dot_dimension_numbers<[1], [0], [0], [1], [0, 0, 1, 1], [], []>} : vector<128x64xbf16>, vector<64x256xbf16>, vector<128x256xf32> -> vector<128x256xf32>
    %c0_16 = arith.constant 0 : index
    %c0_17 = arith.constant 0 : index
    %20 = vector.load %arg8[%c0_16, %c0_17] : memref<128x1xf32, #tpu.memory_space<vmem>>, vector<128x1xf32>
    %21 = vector.broadcast %20 : vector<128x1xf32> to vector<128x256xf32>
    %22 = arith.addf %19, %21 : vector<128x256xf32>
    %c0_18 = arith.constant 0 : index
    %c0_19 = arith.constant 0 : index
    %c0_20 = arith.constant 0 : index
    %23 = vector.load %arg9[%c0_18, %c0_19, %c0_20] : memref<1x128x256xf32, #tpu.memory_space<vmem>>, vector<1x128x256xf32>
    %24 = vector.shape_cast %23 : vector<1x128x256xf32> to vector<128x256xf32>
    %25 = vector.shape_cast %22 : vector<128x256xf32> to vector<1x128x256xf32>
    tpu.vector_store %arg9[%c0_18, %c0_19, %c0_20], %25 {strides = array<i32>} : memref<1x128x256xf32, #tpu.memory_space<vmem>>, vector<1x128x256xf32>,
    return
  }
  func.func @transform_0(%arg0: i32, %arg1: i32) -> (i32, i32, i32) {
    %c0_i32 = arith.constant 0 : i32
    %c0_i32_0 = arith.constant 0 : i32
    return %arg0, %c0_i32, %arg1 : i32, i32, i32
  }
  func.func @transform_1(%arg0: i32, %arg1: i32) -> (i32, i32) {
    %c0_i32 = arith.constant 0 : i32
    %c0_i32_0 = arith.constant 0 : i32
    %c0_i32_1 = arith.constant 0 : i32
    return %c0_i32, %c0_i32_0 : i32, i32
  }
  func.func @transform_2(%arg0: i32, %arg1: i32) -> (i32, i32) {
    %c0_i32 = arith.constant 0 : i32
    %c0_i32_0 = arith.constant 0 : i32
    %c0_i32_1 = arith.constant 0 : i32
    return %c0_i32, %c0_i32_0 : i32, i32
  }
  func.func @transform_3(%arg0: i32, %arg1: i32) -> (i32, i32) {
    %c0_i32 = arith.constant 0 : i32
    %c0_i32_0 = arith.constant 0 : i32
    %c0_i32_1 = arith.constant 0 : i32
    return %c0_i32, %c0_i32_0 : i32, i32
  }
  func.func @transform_4(%arg0: i32, %arg1: i32) -> (i32, i32) {
    %c0_i32 = arith.constant 0 : i32
    %c0_i32_0 = arith.constant 0 : i32
    %c0_i32_1 = arith.constant 0 : i32
    return %c0_i32, %c0_i32_0 : i32, i32
  }
  func.func @transform_5(%arg0: i32, %arg1: i32) -> (i32, i32) {
    %c0_i32 = arith.constant 0 : i32
    %c0_i32_0 = arith.constant 0 : i32
    %c0_i32_1 = arith.constant 0 : i32
    return %c0_i32, %c0_i32_0 : i32, i32
  }
  func.func @transform_6(%arg0: i32, %arg1: i32) -> (i32, i32) {
    %c0_i32 = arith.constant 0 : i32
    %c0_i32_0 = arith.constant 0 : i32
    %c0_i32_1 = arith.constant 0 : i32
    return %c0_i32, %c0_i32_0 : i32, i32
  }
  func.func @transform_7(%arg0: i32, %arg1: i32) -> (i32, i32, i32) {
    %c0_i32 = arith.constant 0 : i32
    %c0_i32_0 = arith.constant 0 : i32
    return %arg0, %c0_i32, %arg1 : i32, i32, i32
  }
}

</mosaic_0001>

<bundles_post_ra>
// kernel: position_encoder_pallas.1
= control target key start
LH: loop header
LB: loop body
LE: loop exit
PB: predicated region body
PF: predicated region fallthrough
CT: control target
= control target key end

     0   :  { %12 = vsyncpa [#allocation3], 0  ;;  %s1606_s0 = inlined_call_operand.vmem [shape: bf16[2,2,256], index: 0, kind: input, shape index: {}]   ;;  %s1607_s1 = inlined_call_operand.vmem [shape: bf16[32,2], index: 1, kind: input, shape index: {}]   ;;  %s1608_s2 = inlined_call_operand.vmem [shape: f32[32,1], index: 2, kind: input, shape index: {}]   ;;  %s1609_s3 = inlined_call_operand.vmem [shape: bf16[64,32], index: 3, kind: input, shape index: {}]   ;;  %s1610_s4 = inlined_call_operand.vmem [shape: f32[64,1], index: 4, kind: input, shape index: {}]   ;;  %s1611_s5 = inlined_call_operand.vmem [shape: bf16[128,64], index: 5, kind: input, shape index: {}]   ;;  %s1612_s6 = inlined_call_operand.vmem [shape: f32[128,1], index: 6, kind: input, shape index: {}]   ;;  %s1613_s7 = inlined_call_operand.hbm [shape: f32[2,128,256], index: 7, kind: output, shape index: {}]  }
   0x1   :  { %14 = vsyncpa [#allocation3 + $0x1], 0  ;;  %s1288_s24 = smov 0   ;;  %s1290_s25 = smov 0  }
   0x2   :  { %s1292_s26 = smov 0   ;;  %s1294_s27 = smov 0  }
   0x3   :  { %s1296_s28 = smov 0   ;;  %s1298_s29 = smov 0  }
   0x4 LB: > { %s983_s30 = sadd.s32 4294967295, %s1243_s29   ;;  %s984_s8 = sadd.s32 4294967294, %s1243_s29   ;;  %s1243_s29 = sphi %s1298_s29, %s20_s29   ;;  %s1239_s28 = sphi %s1296_s28, %s1620_s28   ;;  %s1235_s27 = sphi %s1294_s27, %s1619_s27   ;;  %s1231_s26 = sphi %s1292_s26, %s1618_s26   ;;  %s1227_s25 = sphi %s1290_s25, %s1617_s25   ;;  %s1223_s24 = sphi %s1288_s24, %s1616_s24  }
   0x5   : > { %s32_s9 = sadd.s32 1, %s1239_s28  ;;  %s195_s10 = sadd.s32 1, %s1231_s26 }
   0x6   : > { %p34_p0 = scmp.ge.s32.totalorder %s32_s9, 2  ;;  %p205_p1 = scmp.ne.s32.totalorder %s1231_s26, %s1227_s25 }
   0x7   : > { %p206_p2 = scmp.eq.s32.totalorder %s983_s30, 1  ;;  %p211_p3 = scmp.ne.s32.totalorder %s1227_s25, %s1223_s24 }
   0x8   : > { %s1622_s9 = smov (%p34_p0, %s32_s9), 0  ;;  %p212_p5 = scmp.eq.s32.totalorder %s984_s8, 1 }
   0x9   : > { %p1328_p4 = por %p206_p2, %p205_p1  ;;  %s190_s12 = ssub.s32 %s1239_s28, %s1622_s9 }
   0xa   : > { %p987_p6 = scmp.ge.s32.totalorder %s1243_s29, 1  ;;  %p193_p7 = scmp.eq.s32.totalorder %s190_s12, 0 }
   0xb   : > { %p1335_p8 = por %p212_p5, %p211_p3  ;;  %p260_p9 = scmp.lt.s32.totalorder %s1243_s29, 3 }
   0xc   : > { %s1341_s14 = scalar_select %p193_p7, %s1231_s26, %s195_s10  }
   0xd   : > { %p261_p10 = pnand %p987_p6, %p260_p9 }
   0xe   : > { %p296_p11 = scmp.lt.s32.totalorder (!%p261_p10), %s1235_s27, 1  ;;  %s292_s10 = sand.u32 (!%p261_p10), 1, %s1227_s25  }
   0xf   : > { %264 = sbr.rel (%p261_p10) target bundleno = 620 (0x26c), region = 48  ;;  %s988_s12 = sshll.u32 (!%p261_p10), %s292_s10, 8 }
  0x10   : > { %s1513_s15 = scalar_lea.vmem (!%p261_p10), [#allocation2], %s988_s12  ;;  %s1093_s16 = sshll.u32 (!%p261_p10), %s1235_s27, 8 }
  0x11   : > { %s1185_s12 = scalar_lea.hbm (!%p261_p10), %s1613_s7, 512 }
  0x14   : > { %v313_v0 = vld [vmem:[%s1608_s2 + $0x10] sm:$0xff]  ;;  %v311_v1 = vld [vmem:[%s1608_s2] sm:$0xff]  ;;  %v1245_v2 = vmov 0   ;;  %s297_s19 = scalar_select %p296_p11, %s1235_s27, 1  ;;  %v314_v4 = vld [vmem:[%s1608_s2 + $0x18] sm:$0xff]  ;;  %vm356_vm0 = vcmask 1040384  }
  0x15   : > { %1163 = vset.pattern.permute.xlu1 %v1245_v2  ;;  %1162 = vset.pattern.permute.xlu0 %v1245_v2  ;;  %v312_v5 = vld [vmem:[%s1608_s2 + $0x8] sm:$0xff]  ;;  %v423_v10 = vld [vmem:[%s1610_s4 + $0x20] sm:$0xff]  ;;  %vm349_vm1 = vcmask 15360   ;;  %v422_v14 = vld [vmem:[%s1610_s4 + $0x18] sm:$0xff]  ;;  %vm487_vm2 = vcmask 261120   ;;  %vm734_vm3 = vcmask 523264  }
  0x16   : > { %327 = vperm.xlu0 %1162, %v313_v0   ;;  %317 = vperm.xlu1 %1163, %v311_v1   ;;  %s989_s20 = sshll.u32 %s297_s19, 1  ;;  %v424_v11 = vld [vmem:[%s1610_s4 + $0x28] sm:$0xff]  ;;  %v1079_v13 = vld [vmem:[%s1607_s1] sm:$0xff]  ;;  %v601_v18 = vld [vmem:[%s1612_s6 + $0x18] sm:$0xff]  ;;  %s903_s19 = scalar_lea.hbm %s1613_s7, %s1093_s16 }
  0x17   : > { %1164 = vset.pattern.permute.xlu2 %v1245_v2  ;;  %s302_s23 = scalar_lea.vmem %s1606_s0, %s989_s20  ;;  %v1080_v12 = vld [vmem:[%s1607_s1 + $0x8] sm:$0xff]  ;;  %v419_v15 = vld [vmem:[%s1610_s4] sm:$0xff]  ;;  %v604_v20 = vld [vmem:[%s1612_s6 + $0x30] sm:$0xff]  ;;  %s904_s20 = sshll.u32 %s1513_s15, 4  ;;  %s905_s20 = int_to_ptr.vmem [resolvable:$true] %s904_s20 }
  0x18   : > { %v310_v3 = vld [vmem:[%s302_s23] sm:$0x3]  ;;  %v599_v17 = vld [vmem:[%s1612_s6 + $0x8] sm:$0xff]  ;;  %v605_v21 = vld [vmem:[%s1612_s6 + $0x38] sm:$0xff]  ;;  %s906_s21 = sshll.u32 %s903_s19, 4  ;;  %s890_s27 = scalar_lea.sflag [#allocation3], %s292_s10  ;;  %s907_s21 = int_to_ptr.hbm [resolvable:$true] %s906_s21 }
  0x19   : > { %346 = vst [vmem:[#allocation1] ss:$9 sm:$0xff] %v310_v3  ;;  %v598_v16 = vld [vmem:[%s1612_s6] sm:$0xff]  ;;  %v607_v22 = vld [vmem:[%s1612_s6 + $0x48] sm:$0xff]  ;;  %v608_v23 = vld [vmem:[%s1612_s6 + $0x50] sm:$0xff]  ;;  %s1179_s22 = sshra.s32 %s907_s21, 4  ;;  %s1180_s22 = int_to_ptr.hbm [resolvable:$true] %s1179_s22 }
  0x1a   : > { %v602_v19 = vld [vmem:[%s1612_s6 + $0x20] sm:$0xff]  ;;  %v611_v25 = vld [vmem:[%s1612_s6 + $0x68] sm:$0xff]  ;;  %v613_v26 = vld [vmem:[%s1612_s6 + $0x78] sm:$0xff]  ;;  %s1181_s23 = scalar_lea.hbm %s1180_s22, 256  ;;  %p1186_p1 = scmp.lt.s32.totalorder %s1180_s22, %s1613_s7 }
  0x1b   : > { %v610_v24 = vld [vmem:[%s1612_s6 + $0x60] sm:$0xff]  ;;  %v425_v35 = vld [vmem:[%s1610_s4 + $0x30] sm:$0xff]  ;;  %v426_v61 = vld [vmem:[%s1610_s4 + $0x38] sm:$0xff]  ;;  %p1182_p12 = scmp.ne.s32.totalorder %s1180_s22, %s1181_s23  ;;  %p1187_p2 = scmp.lt.s32.totalorder %s1185_s12, %s1181_s23 }
  0x1c   : > { %459 = vperm.xlu2 %1164, %v425_v35   ;;  %v1081_v60 = vld [vmem:[%s1609_s3] sm:$0xff]  ;;  %v421_v62 = vld [vmem:[%s1610_s4 + $0x10] sm:$0xff]  ;;  %v1082_v63 = vld [vmem:[%s1609_s3 + $0x8] sm:$0xff] }
  0x1d   : > { %v420_v0 = vld [vmem:[%s1610_s4 + $0x8] sm:$0xff]  ;;  %v600_v1 = vld [vmem:[%s1612_s6 + $0x10] sm:$0xff]  ;;  %p1183_p13 = pnand %p1182_p12, %p1328_p4  ;;  %p1188_p3 = por %p1187_p2, %p1186_p1 }
  0x1e   : > { %332 = vperm.xlu0 %1162, %v314_v4   ;;  %322 = vperm.xlu1 %1163, %v312_v5   ;;  %v603_v2 = vld [vmem:[%s1612_s6 + $0x28] sm:$0xff]  ;;  %v1083_v3 = vld [vmem:[%s1609_s3 + $0x10] sm:$0xff]  ;;  %v606_v4 = vld [vmem:[%s1612_s6 + $0x40] sm:$0xff] }
  0x1f   : > { %v609_v5 = vld [vmem:[%s1612_s6 + $0x58] sm:$0xff]  ;;  %p1184_p0 = pneg %p1183_p13 }
  0x20   : > { %v347_v6 = vld [vmem:[#allocation1] sm:$0xff]  ;;  %v348_v7 = vld [vmem:[#allocation1 + $0x9] sm:$0xff] }
  0x21   : > { %v357_v8 = vsel %vm356_vm0, %v347_v6, 0  ;;  %v359_v9 = vsel %vm356_vm0, %v348_v7, 0  ;;  %v1084_v6 = vld [vmem:[%s1609_s3 + $0x18] sm:$0xff]  ;;  %v612_v7 = vld [vmem:[%s1612_s6 + $0x70] sm:$0xff]  ;;  %p1189_p5 = pnand %p1188_p3, %p1184_p0 }
  0x22   : > { %1094 = vmatpush.bf16.msra.mxu2 %v357_v8  ;;  %1095 = vmatpush.bf16.msra.mxu3 %v359_v9 }
  0x23   : > { %368 = vmatpush.bf16.msra.mxu0 %v357_v8  ;;  %387 = vmatpush.bf16.msra.mxu1 %v359_v9 }
  0x24   : > { %464 = vperm.xlu2 %1164, %v426_v61  }
  0x25   : > { %999 = vmatmul.msk.bf16.vlgmr.msra.gmra.mxu2 %vm349_vm1, %v1080_v12  ;;  %1001 = vmatmul.msk.bf16.vlgmr.msra.gmra.mxu3 %vm349_vm1, %v1080_v12 }
  0x26   : > { %449 = vperm.xlu0 %1162, %v423_v10   ;;  %454 = vperm.xlu1 %1163, %v424_v11  }
  0x27   : > { %998 = vmatmul.msk.bf16.vlgmr.msra.gmra.mxu0 %vm349_vm1, %v1079_v13  ;;  %1000 = vmatmul.msk.bf16.vlgmr.msra.gmra.mxu1 %vm349_vm1, %v1079_v13 }
  0x2c   : > { %439 = vperm.xlu2 %1164, %v421_v62  }
  0x2e   : > { %444 = vperm.xlu0 %1162, %v422_v14   ;;  %429 = vperm.xlu1 %1163, %v419_v15  }
  0x34   : > { %434 = vperm.xlu2 %1164, %v420_v0  }
  0x36   : > { %616 = vperm.xlu0 %1162, %v598_v16   ;;  %621 = vperm.xlu1 %1163, %v599_v17  }
  0x3c   : > { %626 = vperm.xlu2 %1164, %v600_v1  }
  0x3e   : > { %631 = vperm.xlu0 %1162, %v601_v18   ;;  %636 = vperm.xlu1 %1163, %v602_v19  }
  0x44   : > { %641 = vperm.xlu2 %1164, %v603_v2  }
  0x46   : > { %646 = vperm.xlu0 %1162, %v604_v20   ;;  %651 = vperm.xlu1 %1163, %v605_v21  }
  0x4c   : > { %656 = vperm.xlu2 %1164, %v606_v4  }
  0x4e   : > { %661 = vperm.xlu0 %1162, %v607_v22   ;;  %666 = vperm.xlu1 %1163, %v608_v23  }
  0x54   : > { %671 = vperm.xlu2 %1164, %v609_v5  }
  0x56   : > { %676 = vperm.xlu0 %1162, %v610_v24   ;;  %681 = vperm.xlu1 %1163, %v611_v25  }
  0x5c   : > { %686 = vperm.xlu2 %1164, %v612_v7  }
  0x5e   : > { %691 = vperm.xlu0 %1162, %v613_v26  }
  0x76   : > { %v460_v18 = vpop.permute.xlu2 %459 }
  0x7e   : > { %v465_v21 = vpop.permute.xlu2 %464 }
  0x86   : > { %v440_v25 = vpop.permute.xlu2 %439 }
  0x88   : > { %v328_v29 = vpop.permute.xlu0 %327  ;;  %v318_v30 = vpop.permute.xlu1 %317 }
  0x90   : > { %v333_v36 = vpop.permute.xlu0 %332  ;;  %v323_v37 = vpop.permute.xlu1 %322 }
  0x98   : > { %v450_v24 = vpop.permute.xlu0 %449  ;;  %v455_v26 = vpop.permute.xlu1 %454 }
  0xa4   : > { %v370_v27 = vpop.f32.mrf.mxu0  ;;  %v389_v28 = vpop.f32.mrf.mxu1 }
  0xa5   : > { %v371_v40 = vadd.f32 %v370_v27, %v318_v30  ;;  %v390_v41 = vadd.f32 %v389_v28, %v318_v30 }
  0xa7   : > { %v399_v52 = vmax.f32 %v371_v40, 0.0  ;;  %v400_v53 = vmax.f32 %v390_v41, 0.0  ;;  %v445_v40 = vpop.permute.xlu0 %444 }
  0xa8   : > { %v375_v31 = vpop.f32.mrf.mxu2  ;;  %v394_v32 = vpop.f32.mrf.mxu3 }
  0xa9   : > { %v376_v38 = vadd.f32 %v375_v31, %v328_v29  ;;  %v395_v39 = vadd.f32 %v394_v32, %v328_v29 }
  0xab   : > { %v403_v48 = vmax.f32 %v376_v38, 0.0  ;;  %v404_v49 = vmax.f32 %v395_v39, 0.0 }
  0xac   : > { %v372_v33 = vpop.f32.mrf.mxu0  ;;  %v391_v34 = vpop.f32.mrf.mxu1 }
  0xad   : > { %v373_v44 = vadd.f32 %v372_v33, %v323_v37  ;;  %v392_v46 = vadd.f32 %v391_v34, %v323_v37 }
  0xaf   : > { %v401_v54 = vmax.f32 %v373_v44, 0.0  ;;  %v402_v55 = vmax.f32 %v392_v46, 0.0 }
  0xb0   : > { %v377_v42 = vpop.f32.mrf.mxu2  ;;  %v396_v43 = vpop.f32.mrf.mxu3 }
  0xb1   : > { %v378_v45 = vadd.f32 %v377_v42, %v333_v36  ;;  %v397_v47 = vadd.f32 %v396_v43, %v333_v36  ;;  %v407_v58 = vpack.c.bf16 %v401_v54, %v399_v52  ;;  %v408_v59 = vpack.c.bf16 %v402_v55, %v400_v53 }
  0xb3   : > { %v405_v50 = vmax.f32 %v378_v45, 0.0  ;;  %v406_v51 = vmax.f32 %v397_v47, 0.0 }
  0xb5   : > { %v409_v56 = vpack.c.bf16 %v405_v50, %v403_v48  ;;  %v410_v57 = vpack.c.bf16 %v406_v51, %v404_v49  ;;  %v435_v50 = vpop.permute.xlu2 %434 }
  0xb7   : > { %506 = vmatpush.bf16.msrb.mxu2 %v409_v56  ;;  %535 = vmatpush.bf16.msrb.mxu3 %v410_v57  ;;  %v430_v56 = vpop.permute.xlu1 %429 }
  0xbb   : > { %507 = vmatpush.bf16.msrb.mxu2 %v407_v58  ;;  %536 = vmatpush.bf16.msrb.mxu3 %v408_v59 }
  0xbe   : > { %1018 = vmatmul.msk.bf16.vlgmr.msrb.gmra.mxu2 %vm487_vm2, %v1081_v60  ;;  %1022 = vmatmul.msk.bf16.vlgmr.msrb.gmra.mxu3 %vm487_vm2, %v1081_v60 }
  0xce   : > { %1019 = vmatmul.msk.bf16.gmra.mxu2 %vm487_vm2, %v1082_v63  ;;  %1023 = vmatmul.msk.bf16.gmra.mxu3 %vm487_vm2, %v1082_v63 }
  0xde   : > { %1020 = vmatmul.msk.bf16.gmra.mxu2 %vm487_vm2, %v1083_v3  ;;  %1024 = vmatmul.msk.bf16.gmra.mxu3 %vm487_vm2, %v1083_v3 }
  0xee   : > { %1021 = vmatmul.msk.bf16.gmra.mxu2 %vm487_vm2, %v1084_v6  ;;  %1025 = vmatmul.msk.bf16.gmra.mxu3 %vm487_vm2, %v1084_v6 }
 0x141   : > { %v509_v8 = vpop.f32.mrf.mxu2  ;;  %v538_v9 = vpop.f32.mrf.mxu3 }
 0x142   : > { %v510_v60 = vadd.f32 %v509_v8, %v430_v56  ;;  %v539_v62 = vadd.f32 %v538_v9, %v430_v56  ;;  %v1085_v8 = vld [vmem:[%s1611_s5] sm:$0xff]  ;;  %v1091_v9 = vld [vmem:[%s1611_s5 + $0x30] sm:$0xff] }
 0x144   : > { %v558_v4 = vmax.f32 %v510_v60, 0.0  ;;  %v559_v5 = vmax.f32 %v539_v62, 0.0 }
 0x149   : > { %v511_v10 = vpop.f32.mrf.mxu2  ;;  %v540_v11 = vpop.f32.mrf.mxu3 }
 0x14a   : > { %v512_v53 = vadd.f32 %v511_v10, %v435_v50  ;;  %v541_v57 = vadd.f32 %v540_v11, %v435_v50  ;;  %v1086_v10 = vld [vmem:[%s1611_s5 + $0x8] sm:$0xff]  ;;  %v1092_v11 = vld [vmem:[%s1611_s5 + $0x38] sm:$0xff] }
 0x14c   : > { %v560_v0 = vmax.f32 %v512_v53, 0.0  ;;  %v561_v2 = vmax.f32 %v541_v57, 0.0 }
 0x14e   : > { %v574_v6 = vpack.c.bf16 %v560_v0, %v558_v4  ;;  %v575_v7 = vpack.c.bf16 %v561_v2, %v559_v5 }
 0x151   : > { %v514_v12 = vpop.f32.mrf.mxu2  ;;  %v543_v13 = vpop.f32.mrf.mxu3 }
 0x152   : > { %v515_v48 = vadd.f32 %v514_v12, %v440_v25  ;;  %v544_v51 = vadd.f32 %v543_v13, %v440_v25  ;;  %v1087_v12 = vld [vmem:[%s1611_s5 + $0x10] sm:$0xff]  ;;  %v1088_v13 = vld [vmem:[%s1611_s5 + $0x18] sm:$0xff] }
 0x154   : > { %v562_v61 = vmax.f32 %v515_v48, 0.0  ;;  %v563_v63 = vmax.f32 %v544_v51, 0.0 }
 0x159   : > { %v516_v14 = vpop.f32.mrf.mxu2  ;;  %v545_v15 = vpop.f32.mrf.mxu3 }
 0x15a   : > { %v517_v42 = vadd.f32 %v516_v14, %v445_v40  ;;  %v546_v46 = vadd.f32 %v545_v15, %v445_v40  ;;  %v1089_v14 = vld [vmem:[%s1611_s5 + $0x20] sm:$0xff]  ;;  %v1090_v15 = vld [vmem:[%s1611_s5 + $0x28] sm:$0xff] }
 0x15c   : > { %v564_v54 = vmax.f32 %v517_v42, 0.0  ;;  %v565_v58 = vmax.f32 %v546_v46, 0.0 }
 0x15e   : > { %v576_v1 = vpack.c.bf16 %v564_v54, %v562_v61  ;;  %v577_v3 = vpack.c.bf16 %v565_v58, %v563_v63 }
 0x161   : > { %v519_v16 = vpop.f32.mrf.mxu2  ;;  %v548_v17 = vpop.f32.mrf.mxu3 }
 0x162   : > { %v520_v34 = vadd.f32 %v519_v16, %v450_v24  ;;  %v549_v41 = vadd.f32 %v548_v17, %v450_v24  ;;  %v617_v16 = vpop.permute.xlu0 %616  ;;  %v622_v17 = vpop.permute.xlu1 %621 }
 0x164   : > { %v566_v49 = vmax.f32 %v520_v34, 0.0  ;;  %v567_v52 = vmax.f32 %v549_v41, 0.0 }
 0x169   : > { %v521_v19 = vpop.f32.mrf.mxu2  ;;  %v550_v20 = vpop.f32.mrf.mxu3 }
 0x16a   : > { %v522_v31 = vadd.f32 %v521_v19, %v455_v26  ;;  %v551_v35 = vadd.f32 %v550_v20, %v455_v26  ;;  %v627_v19 = vpop.permute.xlu2 %626  ;;  %v1498_v20 = vpop.permute.xlu1 %636 }
 0x16c   : > { %v568_v43 = vmax.f32 %v522_v31, 0.0  ;;  %v569_v47 = vmax.f32 %v551_v35, 0.0 }
 0x16e   : > { %v578_v55 = vpack.c.bf16 %v568_v43, %v566_v49  ;;  %v579_v59 = vpack.c.bf16 %v569_v47, %v567_v52 }
 0x171   : > { %v524_v22 = vpop.f32.mrf.mxu2  ;;  %v553_v23 = vpop.f32.mrf.mxu3 }
 0x172   : > { %v525_v27 = vadd.f32 %v524_v22, %v460_v18  ;;  %v554_v28 = vadd.f32 %v553_v23, %v460_v18  ;;  %v632_v18 = vpop.permute.xlu0 %631  ;;  %v1502_v22 = vpop.permute.xlu2 %641 }
 0x173   : > { %v1504_v23 = vpop.permute.xlu1 %651 }
 0x174   : > { %v570_v36 = vmax.f32 %v525_v27, 0.0  ;;  %v571_v37 = vmax.f32 %v554_v28, 0.0 }
 0x179   : > { %v526_v29 = vpop.f32.mrf.mxu2  ;;  %v555_v30 = vpop.f32.mrf.mxu3 }
 0x17a   : > { %v527_v32 = vadd.f32 %v526_v29, %v465_v21  ;;  %v556_v33 = vadd.f32 %v555_v30, %v465_v21  ;;  %v1500_v21 = vpop.permute.xlu0 %646  ;;  %v1511_v28 = vpop.permute.xlu2 %656 }
 0x17b   : > { %v1516_v30 = vpop.permute.xlu1 %666 }
 0x17c   : > { %v572_v38 = vmax.f32 %v527_v32, 0.0  ;;  %v573_v39 = vmax.f32 %v556_v33, 0.0 }
 0x17e   : > { %v580_v44 = vpack.c.bf16 %v572_v38, %v570_v36  ;;  %v581_v45 = vpack.c.bf16 %v573_v39, %v571_v37 }
 0x180   : > { %763 = vmatpush.bf16.msrb.mxu0 %v580_v44  ;;  %1096 = vmatpush.bf16.msra.mxu2 %v580_v44 }
 0x181   : > { %812 = vmatpush.bf16.msrb.mxu1 %v581_v45  ;;  %1100 = vmatpush.bf16.msra.mxu3 %v581_v45 }
 0x182   : > { %v1507_v24 = vpop.permute.xlu0 %661  ;;  %v1522_v40 = vpop.permute.xlu2 %671 }
 0x183   : > { %v682_v41 = vpop.permute.xlu1 %681 }
 0x184   : > { %764 = vmatpush.bf16.msrb.mxu0 %v578_v55  ;;  %1097 = vmatpush.bf16.msra.mxu2 %v578_v55 }
 0x185   : > { %813 = vmatpush.bf16.msrb.mxu1 %v579_v59  ;;  %1101 = vmatpush.bf16.msra.mxu3 %v579_v59 }
 0x188   : > { %765 = vmatpush.bf16.msrb.mxu0 %v576_v1  ;;  %1098 = vmatpush.bf16.msra.mxu2 %v576_v1 }
 0x189   : > { %814 = vmatpush.bf16.msrb.mxu1 %v577_v3  ;;  %1102 = vmatpush.bf16.msra.mxu3 %v577_v3 }
 0x18a   : > { %v677_v31 = vpop.permute.xlu0 %676  ;;  %v687_v50 = vpop.permute.xlu2 %686 }
 0x18c   : > { %766 = vmatpush.bf16.msrb.mxu0 %v574_v6  ;;  %1099 = vmatpush.bf16.msra.mxu2 %v574_v6 }
 0x18d   : > { %815 = vmatpush.bf16.msrb.mxu1 %v575_v7  ;;  %1103 = vmatpush.bf16.msra.mxu3 %v575_v7 }
 0x18f   : > { %1058 = vmatmul.msk.bf16.vlgmr.msrb.gmra.mxu0 %vm734_vm3, %v1085_v8  ;;  %1064 = vmatmul.msk.bf16.vlgmr.msra.gmra.mxu2 %vm734_vm3, %v1091_v9 }
 0x190   : > { %1066 = vmatmul.msk.bf16.vlgmr.msrb.gmra.mxu1 %vm734_vm3, %v1085_v8  ;;  %1072 = vmatmul.msk.bf16.vlgmr.msra.gmra.mxu3 %vm734_vm3, %v1091_v9 }
 0x192   : > { %v692_v59 = vpop.permute.xlu0 %691 }
 0x19f   : > { %1059 = vmatmul.msk.bf16.gmra.mxu0 %vm734_vm3, %v1086_v10  ;;  %1065 = vmatmul.msk.bf16.gmra.mxu2 %vm734_vm3, %v1092_v11 }
 0x1a0   : > { %1067 = vmatmul.msk.bf16.gmra.mxu1 %vm734_vm3, %v1086_v10  ;;  %1073 = vmatmul.msk.bf16.gmra.mxu3 %vm734_vm3, %v1092_v11 }
 0x1af   : > { %1060 = vmatmul.msk.bf16.gmra.mxu0 %vm734_vm3, %v1087_v12 }
 0x1b0   : > { %1068 = vmatmul.msk.bf16.gmra.mxu1 %vm734_vm3, %v1087_v12 }
 0x1bf   : > { %1061 = vmatmul.msk.bf16.gmra.mxu0 %vm734_vm3, %v1088_v13 }
 0x1c0   : > { %1069 = vmatmul.msk.bf16.gmra.mxu1 %vm734_vm3, %v1088_v13 }
 0x1cf   : > { %1062 = vmatmul.msk.bf16.gmra.mxu0 %vm734_vm3, %v1089_v14 }
 0x1d0   : > { %1070 = vmatmul.msk.bf16.gmra.mxu1 %vm734_vm3, %v1089_v14 }
 0x1df   : > { %1063 = vmatmul.msk.bf16.gmra.mxu0 %vm734_vm3, %v1090_v15 }
 0x1e0   : > { %1071 = vmatmul.msk.bf16.gmra.mxu1 %vm734_vm3, %v1090_v15 }
 0x20c   : > { %v768_v25 = vpop.f32.mrf.mxu0 }
 0x20d   : > { %v769_v26 = vadd.f32 %v768_v25, %v617_v16  ;;  %v817_v27 = vpop.f32.mrf.mxu1 }
 0x20e   : > { %v818_v29 = vadd.f32 %v817_v27, %v617_v16 }
 0x20f   : > { %857 = vst [vmem:[%s1513_s15] sm:$0xff] %v769_v26 }
 0x210   : > { %858 = vst [vmem:[%s1513_s15 + $0x8] sm:$0xff] %v818_v29 }
 0x212   : > { %v798_v32 = vpop.f32.mrf.mxu2 }
 0x213   : > { %v799_v33 = vadd.f32 %v798_v32, %v677_v31  ;;  %v847_v34 = vpop.f32.mrf.mxu3 }
 0x214   : > { %v848_v35 = vadd.f32 %v847_v34, %v677_v31  ;;  %v770_v36 = vpop.f32.mrf.mxu0 }
 0x215   : > { %881 = vst [vmem:[%s1513_s15 + $0xc0] sm:$0xff] %v799_v33  ;;  %v771_v37 = vadd.f32 %v770_v36, %v622_v17  ;;  %v819_v38 = vpop.f32.mrf.mxu1 }
 0x216   : > { %882 = vst [vmem:[%s1513_s15 + $0xc8] sm:$0xff] %v848_v35  ;;  %v820_v39 = vadd.f32 %v819_v38, %v622_v17 }
 0x217   : > { %859 = vst [vmem:[%s1513_s15 + $0x10] sm:$0xff] %v771_v37 }
 0x218   : > { %860 = vst [vmem:[%s1513_s15 + $0x18] sm:$0xff] %v820_v39 }
 0x21a   : > { %v800_v42 = vpop.f32.mrf.mxu2 }
 0x21b   : > { %v801_v43 = vadd.f32 %v800_v42, %v682_v41  ;;  %v849_v44 = vpop.f32.mrf.mxu3 }
 0x21c   : > { %v850_v45 = vadd.f32 %v849_v44, %v682_v41  ;;  %v773_v46 = vpop.f32.mrf.mxu0 }
 0x21d   : > { %883 = vst [vmem:[%s1513_s15 + $0xd0] sm:$0xff] %v801_v43  ;;  %v774_v47 = vadd.f32 %v773_v46, %v627_v19  ;;  %v822_v48 = vpop.f32.mrf.mxu1 }
 0x21e   : > { %884 = vst [vmem:[%s1513_s15 + $0xd8] sm:$0xff] %v850_v45  ;;  %v823_v49 = vadd.f32 %v822_v48, %v627_v19 }
 0x21f   : > { %861 = vst [vmem:[%s1513_s15 + $0x20] sm:$0xff] %v774_v47 }
 0x220   : > { %862 = vst [vmem:[%s1513_s15 + $0x28] sm:$0xff] %v823_v49 }
 0x222   : > { %v803_v51 = vpop.f32.mrf.mxu2 }
 0x223   : > { %v804_v52 = vadd.f32 %v803_v51, %v687_v50  ;;  %v852_v53 = vpop.f32.mrf.mxu3 }
 0x224   : > { %v853_v54 = vadd.f32 %v852_v53, %v687_v50  ;;  %v775_v55 = vpop.f32.mrf.mxu0 }
 0x225   : > { %885 = vst [vmem:[%s1513_s15 + $0xe0] sm:$0xff] %v804_v52  ;;  %v776_v56 = vadd.f32 %v775_v55, %v632_v18  ;;  %v824_v57 = vpop.f32.mrf.mxu1 }
 0x226   : > { %886 = vst [vmem:[%s1513_s15 + $0xe8] sm:$0xff] %v853_v54  ;;  %v825_v58 = vadd.f32 %v824_v57, %v632_v18 }
 0x227   : > { %863 = vst [vmem:[%s1513_s15 + $0x30] sm:$0xff] %v776_v56 }
 0x228   : > { %864 = vst [vmem:[%s1513_s15 + $0x38] sm:$0xff] %v825_v58 }
 0x22a   : > { %v805_v60 = vpop.f32.mrf.mxu2 }
 0x22b   : > { %v806_v61 = vadd.f32 %v805_v60, %v692_v59  ;;  %v854_v62 = vpop.f32.mrf.mxu3 }
 0x22c   : > { %v855_v63 = vadd.f32 %v854_v62, %v692_v59  ;;  %v778_v0 = vpop.f32.mrf.mxu0 }
 0x22d   : > { %887 = vst [vmem:[%s1513_s15 + $0xf0] sm:$0xff] %v806_v61  ;;  %v779_v1 = vadd.f32 %v778_v0, %v1498_v20  ;;  %v827_v2 = vpop.f32.mrf.mxu1 }
 0x22e   : > { %888 = vst [vmem:[%s1513_s15 + $0xf8] sm:$0xff] %v855_v63  ;;  %v828_v3 = vadd.f32 %v827_v2, %v1498_v20 }
 0x22f   : > { %865 = vst [vmem:[%s1513_s15 + $0x40] sm:$0xff] %v779_v1 }
 0x230   : > { %866 = vst [vmem:[%s1513_s15 + $0x48] sm:$0xff] %v828_v3 }
 0x234   : > { %v780_v4 = vpop.f32.mrf.mxu0 }
 0x235   : > { %v781_v5 = vadd.f32 %v780_v4, %v1502_v22  ;;  %v829_v6 = vpop.f32.mrf.mxu1 }
 0x236   : > { %v830_v7 = vadd.f32 %v829_v6, %v1502_v22 }
 0x237   : > { %867 = vst [vmem:[%s1513_s15 + $0x50] sm:$0xff] %v781_v5 }
 0x238   : > { %868 = vst [vmem:[%s1513_s15 + $0x58] sm:$0xff] %v830_v7 }
 0x23c   : > { %v783_v8 = vpop.f32.mrf.mxu0 }
 0x23d   : > { %v784_v9 = vadd.f32 %v783_v8, %v1500_v21  ;;  %v832_v10 = vpop.f32.mrf.mxu1 }
 0x23e   : > { %v833_v11 = vadd.f32 %v832_v10, %v1500_v21 }
 0x23f   : > { %869 = vst [vmem:[%s1513_s15 + $0x60] sm:$0xff] %v784_v9 }
 0x240   : > { %870 = vst [vmem:[%s1513_s15 + $0x68] sm:$0xff] %v833_v11 }
 0x244   : > { %v785_v12 = vpop.f32.mrf.mxu0 }
 0x245   : > { %v786_v13 = vadd.f32 %v785_v12, %v1504_v23  ;;  %v834_v14 = vpop.f32.mrf.mxu1 }
 0x246   : > { %v835_v15 = vadd.f32 %v834_v14, %v1504_v23 }
 0x247   : > { %871 = vst [vmem:[%s1513_s15 + $0x70] sm:$0xff] %v786_v13 }
 0x248   : > { %872 = vst [vmem:[%s1513_s15 + $0x78] sm:$0xff] %v835_v15 }
 0x24c   : > { %v788_v16 = vpop.f32.mrf.mxu0 }
 0x24d   : > { %v789_v17 = vadd.f32 %v788_v16, %v1511_v28  ;;  %v837_v18 = vpop.f32.mrf.mxu1 }
 0x24e   : > { %v838_v19 = vadd.f32 %v837_v18, %v1511_v28 }
 0x24f   : > { %873 = vst [vmem:[%s1513_s15 + $0x80] sm:$0xff] %v789_v17 }
 0x250   : > { %874 = vst [vmem:[%s1513_s15 + $0x88] sm:$0xff] %v838_v19 }
 0x254   : > { %v790_v20 = vpop.f32.mrf.mxu0 }
 0x255   : > { %v791_v21 = vadd.f32 %v790_v20, %v1507_v24  ;;  %v839_v22 = vpop.f32.mrf.mxu1 }
 0x256   : > { %v840_v23 = vadd.f32 %v839_v22, %v1507_v24 }
 0x257   : > { %875 = vst [vmem:[%s1513_s15 + $0x90] sm:$0xff] %v791_v21 }
 0x258   : > { %876 = vst [vmem:[%s1513_s15 + $0x98] sm:$0xff] %v840_v23 }
 0x25c   : > { %v793_v25 = vpop.f32.mrf.mxu0 }
 0x25d   : > { %v794_v26 = vadd.f32 %v793_v25, %v1516_v30  ;;  %v842_v27 = vpop.f32.mrf.mxu1 }
 0x25e   : > { %v843_v28 = vadd.f32 %v842_v27, %v1516_v30 }
 0x25f   : > { %877 = vst [vmem:[%s1513_s15 + $0xa0] sm:$0xff] %v794_v26 }
 0x260   : > { %878 = vst [vmem:[%s1513_s15 + $0xa8] sm:$0xff] %v843_v28 }
 0x264   : > { %v795_v24 = vpop.f32.mrf.mxu0 }
 0x265   : > { %v796_v29 = vadd.f32 %v795_v24, %v1522_v40  ;;  %v844_v31 = vpop.f32.mrf.mxu1 }
 0x266   : > { %v845_v32 = vadd.f32 %v844_v31, %v1522_v40 }
 0x267   : > { %879 = vst [vmem:[%s1513_s15 + $0xb0] sm:$0xff] %v796_v29 }
 0x268   : > { %880 = vst [vmem:[%s1513_s15 + $0xb8] sm:$0xff] %v845_v32 }
 0x269   : > { %1192 = shalt.err (!%p1189_p5)
}
 0x26a   : > { %s1246_s10 = smov 256   ;;  %s1247_s15 = smov 16  }
 0x26b   : > { %1104 = dma.vmem_to_hbm [thread:$0]  (%p1328_p4), %s905_s20, 4096, %s907_s21, %s890_s27, %s1246_s10, %s1246_s10, %s1247_s15  }
 0x26c PF: > { %p1110_p6 = scmp.ge.s32.totalorder %s1243_s29, 2  ;;  %s921_s18 = sand.u32 1, %s1223_s24  }
 0x26d   : > { %s922_s19 = scalar_lea.sflag [#allocation3], %s921_s18 }
 0x26e   : > { %p1107_p7 = pnand %p1110_p6, %p1335_p8 }
 0x270   : > { %p1108_p9 = pneg %p1107_p7 }
 0x272   : > { %1218 = dma.done.wait (%p1108_p9), %s922_s19, 4096  }
 0x273   : > { %1220 = vsyncadd (%p1108_p9), %s922_s19, 4294963200  ;;  %s20_s29 = sadd.s32 1, %s1243_s29   ;;  %s1616_s24 = smov %s1227_s25 }
 0x274   : > { %p17_p10 = scmp.ge.s32.totalorder %s20_s29, 4   ;;  %s1617_s25 = smov %s1231_s26 }
 0x275   : > { %s1618_s26 = smov %s1341_s14  ;;  %s1619_s27 = smov %s1239_s28 }
 0x276   : > { %s1620_s28 = smov %s1622_s9  ;;  %19 = sbr.rel (!%p17_p10) target bundleno = 4 (0x4), region = 83 }
 0x27b   :  { %928 = vsyncpa [#allocation3], 1 }
 0x27c   :  { %930 = vsyncpa [#allocation3 + $0x1], 1 }

</bundles_post_ra>
